<compile_context>
chip_gen: v6e
topology: v6e:2x2x1
jax: 0.10.0
libtpu: 0.0.40
codegen_flags: <defaults>
</compile_context>

<pallas_src>
import functools
from random import randrange

import jax
import jax.numpy as jnp
from jax import lax
from jax.experimental import pallas as pl
from jax.experimental.pallas import tpu as pltpu


# ----------------------------------------------------------------------------
# Fused kernel body:  c()  +  n_steps x (diffuse_step + adjust_step)
# ----------------------------------------------------------------------------
def _gad_kernel(W, l, eps, compute_dtype,
                n_ref, k_ref, feats_ref, img_ref, src_ref, mask_ref,
                dv_ref, dwt_ref, uv_ref, uwt_ref,
                out_ref, cv_ref, ch_ref, i_scr):
    H, LW = img_ref.shape            # LW = packed lanes handled by this program
    sh, LSW = src_ref.shape

    # ---- edge-stopping coefficients (fused former c() kernel) ---------------
    k = k_ref[0]                     # traced K (learned logk stays fresh)
    inv_k2 = 1.0 / (k * k)           # one scalar divide
    feats = feats_ref[...]                                    # (C, H, LW)
    mv = jnp.mean(jnp.abs(jnp.roll(feats, -1, axis=1) - feats), axis=0)
    mh = jnp.mean(jnp.abs(jnp.roll(feats, -1, axis=2) - feats), axis=0)
    rows = lax.broadcasted_iota(jnp.int32, (H, LW), 0)
    cols = lax.broadcasted_iota(jnp.int32, (H, LW), 1)
    # last row / last column of every per-image block is zero, which also masks
    # the roll wrap-around (including the cross-image lane wrap).
    cv = jnp.where(rows < H - 1, 1.0 / (1.0 + (mv * mv) * inv_k2), 0.0)
    ch = jnp.where(cols % W < W - 1, 1.0 / (1.0 + (mh * mh) * inv_k2), 0.0)
    cv_ref[...] = cv
    ch_ref[...] = ch

    # ---- loop-invariant hoists ----------------------------------------------
    lcv = l * cv                       # flux coeff of edge (r, r+1)
    lch = l * ch                       # flux coeff of edge (c, c+1)
    cv_up = jnp.roll(lcv, 1, axis=0)   # coeff of edge (r-1, r); row 0 == 0
    ch_lt = jnp.roll(lch, 1, axis=1)   # coeff of edge (c-1, c); col b*W == 0
    c0 = 1.0 - lcv - cv_up - lch - ch_lt   # precomputed center coefficient

    src = src_ref[...]                 # (sh, LSW)
    mask_keep = mask_ref[...] >= 0.5   # True where the LR sample is valid
    ones_ss = jnp.ones_like(src)       # hoisted (no per-iteration broadcast)

    Dv = dv_ref[...].astype(compute_dtype)     # (sh, H)    adaptive avg-pool rows
    DwT = dwt_ref[...].astype(compute_dtype)   # (LW, LSW)  block-diag pool cols^T
    Uv = uv_ref[...].astype(compute_dtype)     # (H, sh)    nearest rows
    UwT = uwt_ref[...].astype(compute_dtype)   # (LSW, LW)  block-diag nearest cols^T

    # contract the larger axis first (static choice from FLOP counts)
    down_rows_first = (sh * H * LW + sh * LW * LSW) <= (H * LW * LSW + sh * H * LSW)
    up_rows_first = (H * sh * LSW + H * LSW * LW) <= (sh * LSW * LW + H * sh * LW)

    def mm(a, b):
        return jnp.dot(a, b, preferred_element_type=jnp.float32)

    i_scr[...] = img_ref[...]

    # traced trip count from SMEM -> one compile even with random npre (train)
    @pl.loop(0, n_ref[0])
    def _(_t):
        I = i_scr[...]
        # ---- diffuse_step: 4 independent shifts, precomputed center coeff ---
        # TODO(synk): try row-shifted loads from an (H+2)-row scratch for the
        #             vertical neighbours instead of XLU rolls (profile on v6e).
        I_dn = jnp.roll(I, -1, axis=0)
        I_up = jnp.roll(I, 1, axis=0)
        I_rt = jnp.roll(I, -1, axis=1)
        I_lt = jnp.roll(I, 1, axis=1)
        I = c0 * I + lcv * I_dn + cv_up * I_up + lch * I_rt + ch_lt * I_lt

        # ---- adjust_step: AdaptiveAvgPool2d + nearest upsample as matmuls ---
        I_m = I.astype(compute_dtype)
        if down_rows_first:
            img_ss = mm(mm(Dv, I_m).astype(compute_dtype), DwT)       # (sh, LSW)
        else:
            img_ss = mm(Dv, mm(I_m, DwT).astype(compute_dtype))
        den = img_ss + eps
        r = pl.reciprocal(den, approx=True)        # EUP vrcp, off the VALU path
        r = r * (2.0 - den * r)                    # one Newton step -> ~f32 accuracy
        ratio_ss = jnp.where(mask_keep, src * r, ones_ss)
        rs_m = ratio_ss.astype(compute_dtype)
        if up_rows_first:
            ratio = mm(mm(Uv, rs_m).astype(compute_dtype), UwT)       # (H, LW)
        else:
            ratio = mm(Uv, mm(rs_m, UwT).astype(compute_dtype))
        i_scr[...] = I * ratio

    out_ref[...] = i_scr[...]


# ----------------------------------------------------------------------------
# VMEM budgeting (v7x has only 64 MiB; derive the limit from shapes)
# ----------------------------------------------------------------------------
def _estimate_vmem_bytes(C, H, LW, sh, LSW):
    f32 = 4
    plane = H * LW * f32
    ss = sh * LSW * f32
    mats = (sh * H + LW * LSW + H * sh + LSW * LW) * f32
    usage = (C * H * LW * f32        # feats
             + plane * 5             # img in, 3 outputs, I scratch
             + plane * 7             # cv/ch/lcv/lch/cv_up/ch_lt/c0
             + plane * 6             # shifted copies / temporaries per step
             + ss * 6                # src, mask, img_ss / ratio temporaries
             + mats)
    return int(usage * 1.5) + (4 << 20)     # margin for compiler-internal scratch


def _vmem_capacity_bytes():
    try:
        return int(pltpu.get_tpu_info().vmem_capacity_bytes)
    except Exception:
        return None


# ----------------------------------------------------------------------------
# pallas_call builder (cached: one compile per static configuration)
# ----------------------------------------------------------------------------
@functools.lru_cache(maxsize=None)
def _make_gad_call(B, C, H, W, sh, sw, l, eps, groups, use_bf16):
    BW = B * W
    Bg = B // groups
    GW, GSW = Bg * W, Bg * sw
    cdt = jnp.bfloat16 if use_bf16 else jnp.float32
    kernel = functools.partial(_gad_kernel, W, float(l), float(eps), cdt)

    est = _estimate_vmem_bytes(C, H, GW, sh, GSW)
    cap = _vmem_capacity_bytes()
    if cap is not None and est > cap:
        raise ValueError(
            f"whole-plane-resident GAD kernel needs ~{est >> 20} MiB VMEM but this "
            f"chip has {cap >> 20} MiB; reduce H*W or the per-call batch")
    limit = max(est, 16 << 20)
    if cap is not None:
        limit = min(limit, cap)

    plane = jax.ShapeDtypeStruct((H, BW), jnp.float32)
    smem = pl.BlockSpec(memory_space=pltpu.MemorySpace.SMEM)

    if groups == 1:
        vmem = pl.BlockSpec(memory_space=pltpu.MemorySpace.VMEM)   # whole array resident
        return pl.pallas_call(
            kernel,
            out_shape=(plane, plane, plane),           # img_out, cv_pad, ch_pad
            in_specs=[smem, smem] + [vmem] * 8,
            out_specs=(vmem, vmem, vmem),
            scratch_shapes=[pltpu.VMEM((H, BW), jnp.float32)],
            compiler_params=pltpu.CompilerParams(vmem_limit_bytes=limit),
        )

    # v7x megacore path: one batch-group per grid step, groups marked 'parallel'.
    in_specs = [
        smem, smem,
        pl.BlockSpec((C, H, GW), lambda g: (0, 0, g)),   # feats
        pl.BlockSpec((H, GW), lambda g: (0, g)),         # img
        pl.BlockSpec((sh, GSW), lambda g: (0, g)),       # src
        pl.BlockSpec((sh, GSW), lambda g: (0, g)),       # mask
        pl.BlockSpec((sh, H), lambda g: (0, 0)),         # Dv   (shared)
        pl.BlockSpec((GW, GSW), lambda g: (0, 0)),       # DwT  (per-group, shared)
        pl.BlockSpec((H, sh), lambda g: (0, 0)),         # Uv
        pl.BlockSpec((GSW, GW), lambda g: (0, 0)),       # UwT
    ]
    out_specs = tuple(pl.BlockSpec((H, GW), lambda g: (0, g)) for _ in range(3))
    return pl.pallas_call(
        kernel,
        out_shape=(plane, plane, plane),
        grid=(groups,),
        in_specs=in_specs,
        out_specs=out_specs,
        scratch_shapes=[pltpu.VMEM((H, GW), jnp.float32)],
        compiler_params=pltpu.CompilerParams(
            dimension_semantics=("parallel",),
            vmem_limit_bytes=limit),
    )


def _auto_groups(B, W, sw):
    # Split the packed batch across 2 TensorCores (v7x) only when each group's
    # packed lane widths stay 128-aligned (Mosaic BlockSpec constraint); the
    # narrow-W demo keeps the single gridless call.
    if B % 2 == 0:
        Bg = B // 2
        if (Bg * W) % 128 == 0 and (Bg * sw) % 128 == 0:
            return 2
    return 1


# ----------------------------------------------------------------------------
# Constant resampling matrices + batch<->lane packing (plain-JAX glue)
# ----------------------------------------------------------------------------
def _avgpool_matrix(out_size, in_size):
    """Row s averages rows [floor(s*in/out), ceil((s+1)*in/out)) -- AdaptiveAvgPool2d."""
    rows = []
    for s in range(out_size):
        start = (s * in_size) // out_size
        end = -((-(s + 1) * in_size) // out_size)
        w = jnp.zeros((in_size,), jnp.float32).at[start:end].set(1.0 / (end - start))
        rows.append(w)
    return jnp.stack(rows)                                     # (out, in)


def _nearest_matrix(out_size, in_size):
    """F.interpolate(mode='nearest'): out index i reads in index floor(i*in/out)."""
    idx = (jnp.arange(out_size) * in_size) // out_size
    return jax.nn.one_hot(idx, in_size, dtype=jnp.float32)     # (out, in)


def _pack_plane(x):
    """(B, 1, H, W) -> (H, B*W): batch packed into the lane axis."""
    B, _, H, W = x.shape
    return jnp.transpose(x[:, 0].astype(jnp.float32), (1, 0, 2)).reshape(H, B * W)


def _unpack_plane(x, B, W):
    """(H, B*W) -> (B, 1, H, W)."""
    H = x.shape[0]
    return jnp.transpose(x.reshape(H, B, W), (1, 0, 2))[:, None]


# ----------------------------------------------------------------------------
# GADBase (JAX / Pallas version)
# ----------------------------------------------------------------------------
class GADBase:
    def __init__(self, feature_extractor='none', Npre=8000, Ntrain=1024,
                 use_bf16_matmuls=True, num_core_groups=None):
        self.feature_extractor_name = feature_extractor
        self.Npre = Npre
        self.Ntrain = Ntrain
        self.use_bf16_matmuls = bool(use_bf16_matmuls)
        self.num_core_groups = num_core_groups
        if feature_extractor == 'none':
            self.feature_extractor = None
            self.Ntrain = 0
            self.logk = jnp.log(jnp.float32(0.03))
        else:
            # TODO(synk): 'UNet' branch (smp resnet50 U-Net + up/down-sampling) not ported.
            raise NotImplementedError(f'Feature extractor {feature_extractor}')

    def __call__(self, sample, train=False, deps=0.1):
        guide, source, mask_lr = sample['guide'], sample['source'], sample['mask_lr']
        # original code shifts depth if it contains values <= deps, then shifts back
        shift = jnp.where(jnp.min(source) <= deps, jnp.float32(deps), jnp.float32(0.0))
        source = source + shift
        y_bicubic = sample['y_bicubic'] + shift

        K = jnp.exp(self.logk)                     # traced -> stays fresh if learned
        y_pred, aux = self.diffuse(y_bicubic, guide, source, mask_lr, K=K, train=train)
        y_pred = y_pred - shift
        return {'y_pred': y_pred, **aux}

    def diffuse(self, img, guide, source, mask_lr, l=0.24, K=0.01, eps=1e-8, train=False):
        B, _, H, W = guide.shape
        _, _, sh, sw = source.shape
        C = guide.shape[1] + img.shape[1]

        # feature_extractor is None -> guide_feats = cat([guide, img], 1)
        guide_feats = jnp.concatenate([guide, img], axis=1).astype(jnp.float32)
        feats_p = jnp.transpose(guide_feats, (1, 2, 0, 3)).reshape(C, H, B * W)
        img_p = _pack_plane(img)
        src_p = _pack_plane(source)
        mask_p = _pack_plane(mask_lr)

        groups = self.num_core_groups or _auto_groups(B, W, sw)
        assert B % groups == 0, "num_core_groups must divide the batch"
        Bg = B // groups

        # Constant pooling / replication matrices; the W-side ones are block-
        # diagonal over the packed batch-lane axis (one block per image).
        # TODO(synk): for large B prefer more grid groups over the dense kron
        #             (its MXU work and VMEM grow with (B/groups)^2 * W * sw).
        Dv = _avgpool_matrix(sh, H)                              # (sh, H)
        Uv = _nearest_matrix(H, sh)                              # (H, sh)
        eyeBg = jnp.eye(Bg, dtype=jnp.float32)
        DwT = jnp.kron(eyeBg, _avgpool_matrix(sw, W).T)          # (Bg*W, Bg*sw)
        UwT = jnp.kron(eyeBg, _nearest_matrix(W, sw).T)          # (Bg*sw, Bg*W)

        npre = (randrange(self.Npre) if train else self.Npre) if self.Npre > 0 else 0
        n_steps = npre + self.Ntrain                             # Ntrain == 0 for 'none'
        n_arr = jnp.asarray([n_steps], jnp.int32)                # traced trip count
        k_arr = jnp.reshape(jnp.asarray(K, jnp.float32), (1,))   # traced K

        call = _make_gad_call(B, C, H, W, sh, sw, float(l), float(eps),
                              groups, self.use_bf16_matmuls)
        out_p, cv_p, ch_p = call(n_arr, k_arr, feats_p, img_p, src_p, mask_p,
                                 Dv, DwT, Uv, UwT)

        img_out = _unpack_plane(out_p, B, W)
        cv = _unpack_plane(cv_p, B, W)[:, :, :H - 1, :]
        ch = _unpack_plane(ch_p, B, W)[:, :, :, :W - 1]
        return img_out, {'cv': cv, 'ch': ch}


# ----------------------------------------------------------------------------
# Pure-JAX reference (mirrors the PyTorch code) for a sanity check
# ----------------------------------------------------------------------------
def _ref_forward(sample, Npre, K, deps=0.1, l=0.24):
    guide, source, mask_lr = sample['guide'], sample['source'], sample['mask_lr']
    shift = jnp.where(jnp.min(source) <= deps, jnp.float32(deps), jnp.float32(0.0))
    source = source + shift
    img = sample['y_bicubic'] + shift
    B, _, H, W = guide.shape
    _, _, sh, sw = source.shape
    fH, fW = H // sh, W // sw                                   # integer ratios in demo
    feats = jnp.concatenate([guide, img], axis=1)

    def gf(x):
        return 1.0 / (1.0 + jnp.abs(x * x) / (K * K))

    cv = gf(jnp.mean(jnp.abs(feats[:, :, 1:, :] - feats[:, :, :-1, :]), axis=1, keepdims=True))
    ch = gf(jnp.mean(jnp.abs(feats[:, :, :, 1:] - feats[:, :, :, :-1]), axis=1, keepdims=True))
    mask_inv = mask_lr < 0.5

    def step(I, _):
        dv = I[:, :, 1:, :] - I[:, :, :-1, :]
        dh = I[:, :, :, 1:] - I[:, :, :, :-1]
        tv = l * cv * dv
        th = l * ch * dh
        I = I.at[:, :, 1:, :].add(-tv).at[:, :, :-1, :].add(tv)
        I = I.at[:, :, :, 1:].add(-th).at[:, :, :, :-1].add(th)
        img_ss = I.reshape(B, 1, sh, fH, sw, fW).mean(axis=(3, 5))
        ratio_ss = source / (img_ss + 1e-8)
        ratio_ss = jnp.where(mask_inv, 1.0, ratio_ss)
        ratio = jnp.repeat(jnp.repeat(ratio_ss, fH, axis=2), fW, axis=3)
        return I * ratio, None

    I, _ = lax.scan(step, img, None, length=Npre)
    return I - shift, cv, ch


# ----------------------------------------------------------------------------
if __name__ == "__main__":
    key = jax.random.PRNGKey(0)
    k1, k2, k3, k4 = jax.random.split(key, 4)

    B, H, W = 2, 16, 16
    sh, sw = 8, 8
    NPRE = 64

    guide = jax.random.uniform(k1, (B, 3, H, W), jnp.float32)
    y_bicubic = jax.random.uniform(k2, (B, 1, H, W), jnp.float32, minval=0.5, maxval=4.0)
    source = jax.random.uniform(k3, (B, 1, sh, sw), jnp.float32, minval=0.5, maxval=4.0)
    mask_lr = (jax.random.uniform(k4, (B, 1, sh, sw), jnp.float32) > 0.2).astype(jnp.float32)

    sample = {'guide': guide, 'source': source, 'mask_lr': mask_lr, 'y_bicubic': y_bicubic}

    # pure-JAX reference of the PyTorch semantics
    K_ref = float(jnp.exp(jnp.log(jnp.float32(0.03))))
    y_ref, cv_ref, ch_ref = _ref_forward(sample, NPRE, K=K_ref)

    # ---- f32-matmul variant: structural correctness at tight tolerance -----
    model_f32 = GADBase(feature_extractor='none', Npre=NPRE, use_bf16_matmuls=False)
    out_f32 = model_f32(sample, train=False)
    y32 = jax.block_until_ready(out_f32['y_pred'])
    cv32 = jax.block_until_ready(out_f32['cv'])
    ch32 = jax.block_until_ready(out_f32['ch'])
    assert y32.shape == (B, 1, H, W)
    assert cv32.shape == (B, 1, H - 1, W) and ch32.shape == (B, 1, H, W - 1)
    assert jnp.allclose(cv32, cv_ref, rtol=1e-4, atol=1e-5), "cv mismatch (f32 path)"
    assert jnp.allclose(ch32, ch_ref, rtol=1e-4, atol=1e-5), "ch mismatch (f32 path)"
    assert jnp.allclose(y32, y_ref, rtol=1e-2, atol=1e-3), "y_pred mismatch (f32 path)"

    # ---- default (bf16 MXU operands): looser tolerance; error from rounding
    # I / ratio_ss to bf16 in the resampling matmuls is bounded by the
    # self-correcting adjust step, not compounded over the 64 iterations. -----
    model = GADBase(feature_extractor='none', Npre=NPRE)   # use_bf16_matmuls=True
    out = model(sample, train=False)
    y_pred = jax.block_until_ready(out['y_pred'])
    cv = jax.block_until_ready(out['cv'])
    ch = jax.block_until_ready(out['ch'])
    assert y_pred.shape == (B, 1, H, W)
    assert jnp.allclose(cv, cv_ref, rtol=1e-4, atol=1e-5), "cv mismatch (bf16 path)"
    assert jnp.allclose(ch, ch_ref, rtol=1e-4, atol=1e-5), "ch mismatch (bf16 path)"
    assert jnp.allclose(y_pred, y_ref, rtol=5e-2, atol=5e-3), "y_pred mismatch (bf16 path)"

    print("KERNEL_OK")
</pallas_src>

<mosaic_0001>
module attributes {stable_mosaic.version = 11 : i64} {
  func.func @_gad_kernel(%arg0: memref<1xi32, #tpu.memory_space<smem>>, %arg1: memref<1xf32, #tpu.memory_space<smem>>, %arg2: memref<4x16x32xf32, #tpu.memory_space<vmem>>, %arg3: memref<16x32xf32, #tpu.memory_space<vmem>>, %arg4: memref<8x16xf32, #tpu.memory_space<vmem>>, %arg5: memref<8x16xf32, #tpu.memory_space<vmem>>, %arg6: memref<8x16xf32, #tpu.memory_space<vmem>>, %arg7: memref<32x16xf32, #tpu.memory_space<vmem>>, %arg8: memref<16x8xf32, #tpu.memory_space<vmem>>, %arg9: memref<16x32xf32, #tpu.memory_space<vmem>>, %arg10: memref<16x32xf32, #tpu.memory_space<vmem>>, %arg11: memref<16x32xf32, #tpu.memory_space<vmem>>, %arg12: memref<16x32xf32, #tpu.memory_space<vmem>>, %arg13: memref<16x32xf32, #tpu.memory_space<vmem>>) attributes {dimension_semantics = [], scalar_prefetch = 0 : i64, scratch_operands = 1 : i64, tpu.core_type = #tpu.core_type<tc>} {
    %c0 = arith.constant 0 : index
    %0 = memref.load %arg1[%c0] : memref<1xf32, #tpu.memory_space<smem>>
    %1 = arith.mulf %0, %0 : f32
    %cst = arith.constant 1.000000e+00 : f32
    %2 = arith.divf %cst, %1 : f32
    %c0_0 = arith.constant 0 : index
    %c0_1 = arith.constant 0 : index
    %c0_2 = arith.constant 0 : index
    %3 = vector.load %arg2[%c0_0, %c0_1, %c0_2] : memref<4x16x32xf32, #tpu.memory_space<vmem>>, vector<4x16x32xf32>
    %4 = vector.extract_strided_slice %3 {offsets = [0, 1, 0], sizes = [4, 15, 32], strides = [1, 1, 1]} : vector<4x16x32xf32> to vector<4x15x32xf32>
    %5 = vector.extract_strided_slice %3 {offsets = [0, 0, 0], sizes = [4, 1, 32], strides = [1, 1, 1]} : vector<4x16x32xf32> to vector<4x1x32xf32>
    %6 = tpu.concatenate %4, %5 in 1 : vector<4x15x32xf32>, vector<4x1x32xf32> -> vector<4x16x32xf32>
    %7 = arith.subf %6, %3 : vector<4x16x32xf32>
    %8 = math.absf %7 : vector<4x16x32xf32>
    %cst_3 = arith.constant dense<0.000000e+00> : vector<16x32xf32>
    %9 = vector.multi_reduction <add>, %8, %cst_3 [0] : vector<4x16x32xf32> to vector<16x32xf32>
    %cst_4 = arith.constant 4.000000e+00 : f32
    %10 = vector.broadcast %cst_4 : f32 to vector<16x32xf32>
    %11 = arith.divf %9, %10 : vector<16x32xf32>
    %12 = vector.extract_strided_slice %3 {offsets = [0, 0, 1], sizes = [4, 16, 31], strides = [1, 1, 1]} : vector<4x16x32xf32> to vector<4x16x31xf32>
    %13 = vector.extract_strided_slice %3 {offsets = [0, 0, 0], sizes = [4, 16, 1], strides = [1, 1, 1]} : vector<4x16x32xf32> to vector<4x16x1xf32>
    %14 = tpu.concatenate %12, %13 in 2 : vector<4x16x31xf32>, vector<4x16x1xf32> -> vector<4x16x32xf32>
    %15 = arith.subf %14, %3 : vector<4x16x32xf32>
    %16 = math.absf %15 : vector<4x16x32xf32>
    %cst_5 = arith.constant dense<0.000000e+00> : vector<16x32xf32>
    %17 = vector.multi_reduction <add>, %16, %cst_5 [0] : vector<4x16x32xf32> to vector<16x32xf32>
    %cst_6 = arith.constant 4.000000e+00 : f32
    %18 = vector.broadcast %cst_6 : f32 to vector<16x32xf32>
    %19 = arith.divf %17, %18 : vector<16x32xf32>
    %20 = tpu.iota {dimensions = array<i32: 0>} : vector<16x32xi32>
    %21 = tpu.iota {dimensions = array<i32: 1>} : vector<16x32xi32>
    %c15_i32 = arith.constant 15 : i32
    %22 = vector.broadcast %c15_i32 : i32 to vector<16x32xi32>
    %23 = arith.cmpi slt, %20, %22 : vector<16x32xi32>
    %24 = arith.mulf %11, %11 : vector<16x32xf32>
    %25 = vector.broadcast %2 : f32 to vector<16x32xf32>
    %26 = arith.mulf %24, %25 : vector<16x32xf32>
    %cst_7 = arith.constant 1.000000e+00 : f32
    %27 = vector.broadcast %cst_7 : f32 to vector<16x32xf32>
    %28 = arith.addf %27, %26 : vector<16x32xf32>
    %cst_8 = arith.constant 1.000000e+00 : f32
    %29 = vector.broadcast %cst_8 : f32 to vector<16x32xf32>
    %30 = arith.divf %29, %28 : vector<16x32xf32>
    %cst_9 = arith.constant 0.000000e+00 : f32
    %31 = vector.broadcast %cst_9 : f32 to vector<16x32xf32>
    %32 = arith.select %23, %30, %31 : vector<16x32xi1>, vector<16x32xf32>
    %c16_i32 = arith.constant 16 : i32
    %c0_i32 = arith.constant 0 : i32
    %33 = arith.cmpi eq, %c16_i32, %c0_i32 : i32
    %c1_i32 = arith.constant 1 : i32
    %34 = arith.select %33, %c1_i32, %c16_i32 : i32
    %35 = vector.broadcast %34 : i32 to vector<16x32xi32>
    %36 = arith.remsi %21, %35 : vector<16x32xi32>
    %c0_i32_10 = arith.constant 0 : i32
    %37 = vector.broadcast %c0_i32_10 : i32 to vector<16x32xi32>
    %38 = arith.cmpi ne, %36, %37 : vector<16x32xi32>
    %c0_i32_11 = arith.constant 0 : i32
    %39 = vector.broadcast %c0_i32_11 : i32 to vector<16x32xi32>
    %40 = arith.cmpi slt, %36, %39 : vector<16x32xi32>
    %c0_i32_12 = arith.constant 0 : i32
    %41 = arith.cmpi slt, %34, %c0_i32_12 : i32
    %42 = vector.broadcast %41 : i1 to vector<16x32xi1>
    %43 = vector.broadcast %42 : vector<16x32xi1> to vector<16x32xi1>
    %44 = arith.xori %40, %43 : vector<16x32xi1>
    %45 = arith.andi %44, %38 : vector<16x32xi1>
    %46 = vector.broadcast %34 : i32 to vector<16x32xi32>
    %47 = arith.addi %36, %46 : vector<16x32xi32>
    %48 = arith.select %45, %47, %36 : vector<16x32xi1>, vector<16x32xi32>
    %c15_i32_13 = arith.constant 15 : i32
    %49 = vector.broadcast %c15_i32_13 : i32 to vector<16x32xi32>
    %50 = arith.cmpi slt, %48, %49 : vector<16x32xi32>
    %51 = arith.mulf %19, %19 : vector<16x32xf32>
    %52 = vector.broadcast %2 : f32 to vector<16x32xf32>
    %53 = arith.mulf %51, %52 : vector<16x32xf32>
    %cst_14 = arith.constant 1.000000e+00 : f32
    %54 = vector.broadcast %cst_14 : f32 to vector<16x32xf32>
    %55 = arith.addf %54, %53 : vector<16x32xf32>
    %cst_15 = arith.constant 1.000000e+00 : f32
    %56 = vector.broadcast %cst_15 : f32 to vector<16x32xf32>
    %57 = arith.divf %56, %55 : vector<16x32xf32>
    %cst_16 = arith.constant 0.000000e+00 : f32
    %58 = vector.broadcast %cst_16 : f32 to vector<16x32xf32>
    %59 = arith.select %50, %57, %58 : vector<16x32xi1>, vector<16x32xf32>
    %c0_17 = arith.constant 0 : index
    %c0_18 = arith.constant 0 : index
    %60 = vector.load %arg11[%c0_17, %c0_18] : memref<16x32xf32, #tpu.memory_space<vmem>>, vector<16x32xf32>
    tpu.vector_store %arg11[%c0_17, %c0_18], %32 {strides = array<i32>} : memref<16x32xf32, #tpu.memory_space<vmem>>, vector<16x32xf32>,
    %c0_19 = arith.constant 0 : index
    %c0_20 = arith.constant 0 : index
    %61 = vector.load %arg12[%c0_19, %c0_20] : memref<16x32xf32, #tpu.memory_space<vmem>>, vector<16x32xf32>
    tpu.vector_store %arg12[%c0_19, %c0_20], %59 {strides = array<i32>} : memref<16x32xf32, #tpu.memory_space<vmem>>, vector<16x32xf32>,
    %cst_21 = arith.constant 2.400000e-01 : f32
    %62 = vector.broadcast %cst_21 : f32 to vector<16x32xf32>
    %63 = arith.mulf %62, %32 : vector<16x32xf32>
    %cst_22 = arith.constant 2.400000e-01 : f32
    %64 = vector.broadcast %cst_22 : f32 to vector<16x32xf32>
    %65 = arith.mulf %64, %59 : vector<16x32xf32>
    %66 = vector.extract_strided_slice %63 {offsets = [15, 0], sizes = [1, 32], strides = [1, 1]} : vector<16x32xf32> to vector<1x32xf32>
    %67 = vector.extract_strided_slice %63 {offsets = [0, 0], sizes = [15, 32], strides = [1, 1]} : vector<16x32xf32> to vector<15x32xf32>
    %68 = tpu.concatenate %66, %67 in 0 : vector<1x32xf32>, vector<15x32xf32> -> vector<16x32xf32>
    %69 = vector.extract_strided_slice %65 {offsets = [0, 31], sizes = [16, 1], strides = [1, 1]} : vector<16x32xf32> to vector<16x1xf32>
    %70 = vector.extract_strided_slice %65 {offsets = [0, 0], sizes = [16, 31], strides = [1, 1]} : vector<16x32xf32> to vector<16x31xf32>
    %71 = tpu.concatenate %69, %70 in 1 : vector<16x1xf32>, vector<16x31xf32> -> vector<16x32xf32>
    %cst_23 = arith.constant 1.000000e+00 : f32
    %72 = vector.broadcast %cst_23 : f32 to vector<16x32xf32>
    %73 = arith.subf %72, %63 : vector<16x32xf32>
    %74 = arith.subf %73, %68 : vector<16x32xf32>
    %75 = arith.subf %74, %65 : vector<16x32xf32>
    %76 = arith.subf %75, %71 : vector<16x32xf32>
    %c0_24 = arith.constant 0 : index
    %c0_25 = arith.constant 0 : index
    %77 = vector.load %arg4[%c0_24, %c0_25] : memref<8x16xf32, #tpu.memory_space<vmem>>, vector<8x16xf32>
    %c0_26 = arith.constant 0 : index
    %c0_27 = arith.constant 0 : index
    %78 = vector.load %arg5[%c0_26, %c0_27] : memref<8x16xf32, #tpu.memory_space<vmem>>, vector<8x16xf32>
    %cst_28 = arith.constant 5.000000e-01 : f32
    %79 = vector.broadcast %cst_28 : f32 to vector<8x16xf32>
    %80 = arith.cmpf oge, %78, %79 : vector<8x16xf32>
    %cst_29 = arith.constant 1.000000e+00 : f32
    %81 = vector.broadcast %cst_29 : f32 to vector<8x16xf32>
    %c0_30 = arith.constant 0 : index
    %c0_31 = arith.constant 0 : index
    %82 = vector.load %arg6[%c0_30, %c0_31] : memref<8x16xf32, #tpu.memory_space<vmem>>, vector<8x16xf32>
    %c0_32 = arith.constant 0 : index
    %c0_33 = arith.constant 0 : index
    %83 = vector.load %arg7[%c0_32, %c0_33] : memref<32x16xf32, #tpu.memory_space<vmem>>, vector<32x16xf32>
    %c0_34 = arith.constant 0 : index
    %c0_35 = arith.constant 0 : index
    %84 = vector.load %arg8[%c0_34, %c0_35] : memref<16x8xf32, #tpu.memory_space<vmem>>, vector<16x8xf32>
    %c0_36 = arith.constant 0 : index
    %c0_37 = arith.constant 0 : index
    %85 = vector.load %arg9[%c0_36, %c0_37] : memref<16x32xf32, #tpu.memory_space<vmem>>, vector<16x32xf32>
    %c0_38 = arith.constant 0 : index
    %c0_39 = arith.constant 0 : index
    %86 = vector.load %arg3[%c0_38, %c0_39] : memref<16x32xf32, #tpu.memory_space<vmem>>, vector<16x32xf32>
    %c0_40 = arith.constant 0 : index
    %c0_41 = arith.constant 0 : index
    %87 = vector.load %arg13[%c0_40, %c0_41] : memref<16x32xf32, #tpu.memory_space<vmem>>, vector<16x32xf32>
    tpu.vector_store %arg13[%c0_40, %c0_41], %86 {strides = array<i32>} : memref<16x32xf32, #tpu.memory_space<vmem>>, vector<16x32xf32>,
    %c0_42 = arith.constant 0 : index
    %88 = memref.load %arg0[%c0_42] : memref<1xi32, #tpu.memory_space<smem>>
    %c0_i32_43 = arith.constant 0 : i32
    %89 = arith.subi %88, %c0_i32_43 : i32
    %c1_i32_44 = arith.constant 1 : i32
    %c1_i32_45 = arith.constant 1 : i32
    %90 = arith.subi %c1_i32_44, %c1_i32_45 : i32
    %91 = arith.addi %89, %90 : i32
    %c1_i32_46 = arith.constant 1 : i32
    %92 = arith.divsi %91, %c1_i32_46 : i32
    %c1_i32_47 = arith.constant 1 : i32
    %c0_i32_48 = arith.constant 0 : i32
    %c0_i32_49 = arith.constant 0 : i32
    %93 = arith.subi %92, %c0_i32_49 : i32
    %94 = arith.addi %c0_i32_49, %93 : i32
    %c1_i32_50 = arith.constant 1 : i32
    scf.for %arg14 = %c0_i32_49 to %94 step %c1_i32_50  : i32 {
      %97 = arith.muli %arg14, %c1_i32_47 : i32
      %98 = arith.addi %c0_i32_48, %97 : i32
      %c0_55 = arith.constant 0 : index
      %c0_56 = arith.constant 0 : index
      %99 = vector.load %arg13[%c0_55, %c0_56] : memref<16x32xf32, #tpu.memory_space<vmem>>, vector<16x32xf32>
      %100 = vector.extract_strided_slice %99 {offsets = [1, 0], sizes = [15, 32], strides = [1, 1]} : vector<16x32xf32> to vector<15x32xf32>
      %101 = vector.extract_strided_slice %99 {offsets = [0, 0], sizes = [1, 32], strides = [1, 1]} : vector<16x32xf32> to vector<1x32xf32>
      %102 = tpu.concatenate %100, %101 in 0 : vector<15x32xf32>, vector<1x32xf32> -> vector<16x32xf32>
      %103 = vector.extract_strided_slice %99 {offsets = [15, 0], sizes = [1, 32], strides = [1, 1]} : vector<16x32xf32> to vector<1x32xf32>
      %104 = vector.extract_strided_slice %99 {offsets = [0, 0], sizes = [15, 32], strides = [1, 1]} : vector<16x32xf32> to vector<15x32xf32>
      %105 = tpu.concatenate %103, %104 in 0 : vector<1x32xf32>, vector<15x32xf32> -> vector<16x32xf32>
      %106 = vector.extract_strided_slice %99 {offsets = [0, 1], sizes = [16, 31], strides = [1, 1]} : vector<16x32xf32> to vector<16x31xf32>
      %107 = vector.extract_strided_slice %99 {offsets = [0, 0], sizes = [16, 1], strides = [1, 1]} : vector<16x32xf32> to vector<16x1xf32>
      %108 = tpu.concatenate %106, %107 in 1 : vector<16x31xf32>, vector<16x1xf32> -> vector<16x32xf32>
      %109 = vector.extract_strided_slice %99 {offsets = [0, 31], sizes = [16, 1], strides = [1, 1]} : vector<16x32xf32> to vector<16x1xf32>
      %110 = vector.extract_strided_slice %99 {offsets = [0, 0], sizes = [16, 31], strides = [1, 1]} : vector<16x32xf32> to vector<16x31xf32>
      %111 = tpu.concatenate %109, %110 in 1 : vector<16x1xf32>, vector<16x31xf32> -> vector<16x32xf32>
      %112 = arith.mulf %76, %99 : vector<16x32xf32>
      %113 = arith.mulf %63, %102 : vector<16x32xf32>
      %114 = arith.addf %112, %113 : vector<16x32xf32>
      %115 = arith.mulf %68, %105 : vector<16x32xf32>
      %116 = arith.addf %114, %115 : vector<16x32xf32>
      %117 = arith.mulf %65, %108 : vector<16x32xf32>
      %118 = arith.addf %116, %117 : vector<16x32xf32>
      %119 = arith.mulf %71, %111 : vector<16x32xf32>
      %120 = arith.addf %118, %119 : vector<16x32xf32>
      %cst_57 = arith.constant dense<0.000000e+00> : vector<8x32xf32>
      %121 = tpu.matmul %82, %120, %cst_57 {dimension_numbers = #tpu.dot_dimension_numbers<[1], [0], [0], [1], [0, 0, 1, 1], [], []>} : vector<8x16xf32>, vector<16x32xf32>, vector<8x32xf32> -> vector<8x32xf32>
      %cst_58 = arith.constant dense<0.000000e+00> : vector<8x16xf32>
      %122 = tpu.matmul %121, %83, %cst_58 {dimension_numbers = #tpu.dot_dimension_numbers<[1], [0], [0], [1], [0, 0, 1, 1], [], []>} : vector<8x32xf32>, vector<32x16xf32>, vector<8x16xf32> -> vector<8x16xf32>
      %cst_59 = arith.constant 9.99999993E-9 : f32
      %123 = vector.broadcast %cst_59 : f32 to vector<8x16xf32>
      %124 = arith.addf %122, %123 : vector<8x16xf32>
      %125 = tpu.reciprocal %124 {approx = true} : vector<8x16xf32> -> vector<8x16xf32>
      %126 = arith.mulf %124, %125 : vector<8x16xf32>
      %cst_60 = arith.constant 2.000000e+00 : f32
      %127 = vector.broadcast %cst_60 : f32 to vector<8x16xf32>
      %128 = arith.subf %127, %126 : vector<8x16xf32>
      %129 = arith.mulf %125, %128 : vector<8x16xf32>
      %130 = arith.mulf %77, %129 : vector<8x16xf32>
      %131 = arith.select %80, %130, %81 : vector<8x16xi1>, vector<8x16xf32>
      %cst_61 = arith.constant dense<0.000000e+00> : vector<8x32xf32>
      %132 = tpu.matmul %131, %85, %cst_61 {dimension_numbers = #tpu.dot_dimension_numbers<[1], [0], [0], [1], [0, 0, 1, 1], [], []>} : vector<8x16xf32>, vector<16x32xf32>, vector<8x32xf32> -> vector<8x32xf32>
      %cst_62 = arith.constant dense<0.000000e+00> : vector<16x32xf32>
      %133 = tpu.matmul %84, %132, %cst_62 {dimension_numbers = #tpu.dot_dimension_numbers<[1], [0], [0], [1], [0, 0, 1, 1], [], []>} : vector<16x8xf32>, vector<8x32xf32>, vector<16x32xf32> -> vector<16x32xf32>
      %134 = arith.mulf %120, %133 : vector<16x32xf32>
      %c0_63 = arith.constant 0 : index
      %c0_64 = arith.constant 0 : index
      %135 = vector.load %arg13[%c0_63, %c0_64] : memref<16x32xf32, #tpu.memory_space<vmem>>, vector<16x32xf32>
      tpu.vector_store %arg13[%c0_63, %c0_64], %134 {strides = array<i32>} : memref<16x32xf32, #tpu.memory_space<vmem>>, vector<16x32xf32>,
    }
    %c0_51 = arith.constant 0 : index
    %c0_52 = arith.constant 0 : index
    %95 = vector.load %arg13[%c0_51, %c0_52] : memref<16x32xf32, #tpu.memory_space<vmem>>, vector<16x32xf32>
    %c0_53 = arith.constant 0 : index
    %c0_54 = arith.constant 0 : index
    %96 = vector.load %arg10[%c0_53, %c0_54] : memref<16x32xf32, #tpu.memory_space<vmem>>, vector<16x32xf32>
    tpu.vector_store %arg10[%c0_53, %c0_54], %95 {strides = array<i32>} : memref<16x32xf32, #tpu.memory_space<vmem>>, vector<16x32xf32>,
    return
  }
}

</mosaic_0001>

<bundles_post_ra>
// kernel: tpu_custom_call.1
= control target key start
LH: loop header
LB: loop body
LE: loop exit
PB: predicated region body
PF: predicated region fallthrough
CT: control target
= control target key end

     0   :  { %20 = vsyncpa [#allocation6], 0  ;;  %s1478_s0 = inlined_call_operand.<no memory space> [shape: s32[1], index: 0, kind: input, shape index: {}]   ;;  %s1479_s1 = inlined_call_operand.<no memory space> [shape: f32[1], index: 1, kind: input, shape index: {}]   ;;  %s1480_s2 = inlined_call_operand.vmem [shape: f32[4,16,32], index: 2, kind: input, shape index: {}]   ;;  %s1481_s3 = inlined_call_operand.hbm [shape: f32[16,32], index: 3, kind: input, shape index: {}]   ;;  %s1482_s4 = inlined_call_operand.hbm [shape: f32[8,16], index: 4, kind: input, shape index: {}]   ;;  %s1483_s5 = inlined_call_operand.hbm [shape: f32[8,16], index: 5, kind: input, shape index: {}]   ;;  %s1484_s6 = inlined_call_operand.hbm [shape: f32[8,16], index: 6, kind: input, shape index: {}]   ;;  %s1485_s7 = inlined_call_operand.vmem [shape: f32[32,16], index: 7, kind: input, shape index: {}]   ;;  %s1486_s8 = inlined_call_operand.vmem [shape: f32[16,8], index: 8, kind: input, shape index: {}]   ;;  %s1487_s9 = inlined_call_operand.vmem [shape: f32[16,32], index: 9, kind: input, shape index: {}]   ;;  %s1488_s10 = inlined_call_operand.hbm [shape: f32[16,32], index: 10, kind: output, shape index: {0}]   ;;  %s1489_s11 = inlined_call_operand.hbm [shape: f32[16,32], index: 11, kind: output, shape index: {1}]   ;;  %s1490_s12 = inlined_call_operand.hbm [shape: f32[16,32], index: 12, kind: output, shape index: {2}]  }
   0x1   :  { %21 = vsyncpa [#allocation9], 0 }
   0x2   :  { %22 = vsyncpa [#allocation12], 0 }
   0x3   :  { %23 = vsyncpa [#allocation7], 0 }
   0x4   :  { %24 = vsyncpa [#allocation15], 0  ;;  %s1059_s21 = smov [#allocation8]   ;;  %s1060_s23 = smov [#allocation5]  }
   0x5   :  { %s49_s22 = sshll.u32 %s1059_s21, 4  ;;  %s36_s24 = sshll.u32 %s1060_s23, 4  ;;  %s50_s22 = int_to_ptr.vmem [resolvable:$true] %s49_s22  ;;  %s37_s24 = int_to_ptr.vmem [resolvable:$true] %s36_s24 }
   0x6   :  { %s909_s25 = scalar_lea.vmem %s50_s22, 128  ;;  %p914_p1 = scmp.lt.s32.totalorder %s50_s22, %s50_s22 }
   0x7   :  { %p910_p0 = scmp.ne.s32.totalorder %s50_s22, %s909_s25  ;;  %p915_p2 = scmp.lt.s32.totalorder %s909_s25, %s909_s25 }
   0x9   :  { %p916_p3 = por %p915_p2, %p914_p1 }
   0xb   :  { %p917_p4 = pnand %p916_p3, %p910_p0 }
   0xd   :  { %920 = shalt.err (!%p917_p4)
}
   0xe   :  { %52 = dma.hbm_to_vmem [thread:$0]  %s1482_s4, 128, %s50_s22, [#allocation9]  }
   0xf   :  { %s929_s28 = scalar_lea.vmem %s37_s24, 256  ;;  %p934_p6 = scmp.lt.s32.totalorder %s37_s24, %s37_s24 }
  0x10   :  { %p930_p5 = scmp.ne.s32.totalorder %s37_s24, %s929_s28  ;;  %p935_p7 = scmp.lt.s32.totalorder %s929_s28, %s929_s28 }
  0x12   :  { %p936_p8 = por %p935_p7, %p934_p6 }
  0x14   :  { %p937_p9 = pnand %p936_p8, %p930_p5 }
  0x16   :  { %940 = shalt.err (!%p937_p9)
}
  0x17   :  { %s1061_s29 = smov 128   ;;  %s1062_s30 = smov 8  }
  0x18   :  { %42 = dma.hbm_to_vmem [thread:$0]  %s1481_s3, 256, %s37_s24, [#allocation6], %s1061_s29, %s1061_s29, %s1062_s30  }
  0x19   :  { %s1063_s15 = smov [#allocation10]   ;;  %s1064_s17 = smov [#allocation11]  }
  0x1a   :  { %s59_s16 = sshll.u32 %s1063_s15, 4  ;;  %s69_s4 = sshll.u32 %s1064_s17, 4  ;;  %s60_s16 = int_to_ptr.vmem [resolvable:$true] %s59_s16  ;;  %s70_s4 = int_to_ptr.vmem [resolvable:$true] %s69_s4 }
  0x1b   :  { %s949_s18 = scalar_lea.vmem %s60_s16, 128  ;;  %p954_p11 = scmp.lt.s32.totalorder %s60_s16, %s60_s16 }
  0x1c   :  { %p950_p10 = scmp.ne.s32.totalorder %s60_s16, %s949_s18  ;;  %p955_p12 = scmp.lt.s32.totalorder %s949_s18, %s949_s18 }
  0x1e   :  { %p956_p13 = por %p955_p12, %p954_p11 }
  0x20   :  { %p957_p0 = pnand %p956_p13, %p950_p10 }
  0x22   :  { %960 = shalt.err (!%p957_p0)
}
  0x23   :  { %62 = dma.hbm_to_vmem [thread:$0]  %s1483_s5, 128, %s60_s16, [#allocation9]  }
  0x24   :  { %s969_s21 = scalar_lea.vmem %s70_s4, 128  ;;  %p974_p2 = scmp.lt.s32.totalorder %s70_s4, %s70_s4 }
  0x25   :  { %p970_p1 = scmp.ne.s32.totalorder %s70_s4, %s969_s21  ;;  %p975_p3 = scmp.lt.s32.totalorder %s969_s21, %s969_s21 }
  0x27   :  { %p976_p4 = por %p975_p3, %p974_p2 }
  0x29   :  { %p977_p5 = pnand %p976_p4, %p970_p1 }
  0x2b   :  { %980 = shalt.err (!%p977_p5)
}
  0x2c   :  { %72 = dma.hbm_to_vmem [thread:$0]  %s1484_s6, 128, %s70_s4, [#allocation12]  }
  0x2d   :  { %1045 = dma.done.wait [#allocation6], 256  }
  0x2e   :  { %1046 = vsyncadd [#allocation6], 4294967040 }
  0x2f   :  { %1047 = dma.done.wait [#allocation9], 256  }
  0x30   :  { %1048 = vsyncadd [#allocation9], 4294967040 }
  0x31   :  { %1049 = dma.done.wait [#allocation12], 128  }
  0x32   :  { %1050 = vsyncadd [#allocation12], 4294967168  ;;  %s92_s5 = smul.f32 %s1479_s1, %s1479_s1  ;;  %v1162_v1 = vld [vmem:[#allocation8] sm:$0xff]  ;;  %v1164_v2 = vld [vmem:[#allocation10] sm:$0xff]  ;;  %vm157_vm1 = vcmask 261120   ;;  %s1065_s23 = smov 127  }
  0x33   :  { %v1166_v3 = vld [vmem:[#allocation11] sm:$0xff]  ;;  %vm354_vm0 = vcmp.ge.f32.partialorder %v1164_v2, 0.5  ;;  %v1172_v4 = vld [vmem:[%s1485_s7] sm:$0xff]  ;;  %v1177_v5 = vld [vmem:[%s1485_s7 + $0x8] sm:$0xff]  ;;  %s1066_s25 = smov 31   ;;  %vm112_vm2 = vcmask 1046528  }
  0x34   :  { %v93_v0 = vstv %s92_s5  ;;  %v1182_v6 = vld [vmem:[%s1485_s7 + $0x10] sm:$0xff]  ;;  %v1187_v7 = vld [vmem:[%s1485_s7 + $0x18] sm:$0xff]  ;;  %v1192_v8 = vld [vmem:[%s1486_s8] sm:$0xff]  ;;  %vm321_vm4 = vcmask 1040384   ;;  %vm223_vm5 = vcmask 252928   ;;  %s1067_s17 = smov 97  }
  0x35   :  { %889 = vrcp.f32 %v93_v0  ;;  %v1197_v9 = vld [vmem:[%s1486_s8 + $0x8] sm:$0xff]  ;;  %v1202_v10 = vld [vmem:[%s1487_s9] sm:$0xff]  ;;  %v364_v12 = vld [vmem:[#allocation5] sm:$0xff]  ;;  %s1068_s4 = smov 1   ;;  %vm341_vm7 = vcmask 7168   ;;  %p810_p6 = scmp.le.s32.totalorder %s1478_s0, 0 }
  0x36   :  { %v1207_v11 = vld [vmem:[%s1487_s9 + $0x8] sm:$0xff]  ;;  %v365_v13 = vld [vmem:[#allocation5 + $0x8] sm:$0xff]  ;;  %366 = vst.msk [vmem:[#allocation2] sm:$0xff] %vm157_vm1, %v364_v12  ;;  %v1213_v14 = vld [vmem:[%s1480_s2 + $0x10] sm:$0xff]  ;;  %s1398_s20 = smov (!%p810_p6), 0  }
  0x37   :  { %v1218_v15 = vld [vmem:[%s1480_s2] sm:$0xff]  ;;  %367 = vst.msk [vmem:[#allocation2 + $0x8] sm:$0xff] %vm157_vm1, %v365_v13  ;;  %179 = vrot.lane.b32.xlu1 %v1213_v14, %s1065_s23  ;;  %v1228_v16 = vld [vmem:[%s1480_s2 + $0x18] sm:$0xff]  ;;  %v1233_v17 = vld [vmem:[%s1480_s2 + $0x8] sm:$0xff]  ;;  %v116_v21 = vrot.slane %v1213_v14, 1 }
  0x38   :  { %175 = vrot.lane.b32.xlu0 %v1218_v15, %s1065_s23  ;;  %v1250_v19 = vld [vmem:[%s1480_s2 + $0x28] sm:$0xff]  ;;  %v1255_v20 = vld [vmem:[%s1480_s2 + $0x20] sm:$0xff]  ;;  %v113_v22 = vrot.slane %v1218_v15, 1  ;;  %v117_v23 = vrot.slane %v1228_v16, 1  ;;  %v114_v24 = vrot.slane %v1233_v17, 1  ;;  %v1272_v25 = vld [vmem:[%s1480_s2 + $0x38] sm:$0xff] }
  0x39   :  { %v1277_v26 = vld [vmem:[%s1480_s2 + $0x30] sm:$0xff]  ;;  %v120_v29 = vrot.slane %v1250_v19, 1  ;;  %v119_v30 = vrot.slane %v1255_v20, 1  ;;  %v123_v35 = vrot.slane %v1272_v25, 1 }
  0x3a   :  { %v138_v27 = vsel %vm112_vm2, %v117_v23, %v116_v21  ;;  %v137_v28 = vsel %vm112_vm2, %v114_v24, %v113_v22  ;;  %v115_v31 = vsel %vm112_vm2, %v113_v22, %v114_v24  ;;  %v118_v32 = vsel %vm112_vm2, %v116_v21, %v117_v23 }
  0x3b   :  { %181 = vrot.lane.b32.xlu1 %v1228_v16, %s1065_s23  ;;  %v144_v33 = vsub.f32 %v138_v27, %v1228_v16  ;;  %v142_v34 = vsub.f32 %v137_v28, %v1233_v17  ;;  %v122_v36 = vrot.slane %v1277_v26, 1  ;;  %v121_v37 = vsel %vm112_vm2, %v119_v30, %v120_v29 }
  0x3c   :  { %177 = vrot.lane.b32.xlu0 %v1233_v17, %s1065_s23  ;;  %v139_v38 = vsel %vm112_vm2, %v120_v29, %v119_v30  ;;  %v141_v39 = vsub.f32 %v115_v31, %v1218_v15  ;;  %v143_v40 = vsub.f32 %v118_v32, %v1213_v14  ;;  %v145_v43 = vsub.f32 %v121_v37, %v1255_v20 }
  0x3d   :  { %v152_v41 = vand.u32 2147483647, %v144_v33  ;;  %v150_v42 = vand.u32 2147483647, %v142_v34  ;;  %v146_v44 = vsub.f32 %v139_v38, %v1250_v19  ;;  %v124_v45 = vsel %vm112_vm2, %v122_v36, %v123_v35 }
  0x3e   :  { %v140_v46 = vsel %vm112_vm2, %v123_v35, %v122_v36  ;;  %v149_v47 = vand.u32 2147483647, %v141_v39  ;;  %v151_v48 = vand.u32 2147483647, %v143_v40  ;;  %v147_v49 = vsub.f32 %v124_v45, %v1277_v26 }
  0x3f   :  { %201 = vrot.lane.b32.xlu1 %v1233_v17, %s1066_s25  ;;  %v148_v50 = vsub.f32 %v140_v46, %v1272_v25  ;;  %v154_v51 = vand.u32 2147483647, %v146_v44  ;;  %v165_v52 = vsel %vm157_vm1, %v150_v42, 0.0  ;;  %v153_v53 = vand.u32 2147483647, %v145_v43 }
  0x40   :  { %199 = vrot.lane.b32.xlu0 %v1218_v15, %s1066_s25  ;;  %v158_v54 = vsel %vm157_vm1, %v149_v47, 0.0  ;;  %v159_v55 = vsel %vm157_vm1, %v151_v48, 0.0  ;;  %v166_v56 = vsel %vm157_vm1, %v152_v41, 0.0  ;;  %v155_v59 = vand.u32 2147483647, %v147_v49 }
  0x41   :  { %v160_v57 = vadd.f32 %v159_v55, %v158_v54  ;;  %v167_v58 = vadd.f32 %v166_v56, %v165_v52  ;;  %v156_v60 = vand.u32 2147483647, %v148_v50  ;;  %v161_v61 = vsel %vm157_vm1, %v153_v53, 0.0 }
  0x42   :  { %v890_v18 = vpop.eup %889  ;;  %v168_v62 = vsel %vm157_vm1, %v154_v51, 0.0  ;;  %v163_v12 = vsel %vm157_vm1, %v155_v59, 0.0  ;;  %v264_v33 = vlaneseq }
  0x43   :  { %860 = vpush %v890_v18  ;;  %205 = vrot.lane.b32.xlu1 %v1228_v16, %s1066_s25  ;;  %v162_v63 = vadd.f32 %v161_v61, %v160_v57  ;;  %v169_v0 = vadd.f32 %v168_v62, %v167_v58  ;;  %v170_v13 = vsel %vm157_vm1, %v156_v60, 0.0 }
  0x44   :  { %203 = vrot.lane.b32.xlu0 %v1213_v14, %s1066_s25  ;;  %v265_v34 = vshrl.u32 %v264_v33, 7 }
  0x45   :  { %v164_v18 = vadd.f32 %v163_v12, %v162_v63  ;;  %v171_v21 = vadd.f32 %v170_v13, %v169_v0 }
  0x46   :  { %v266_v35 = vadd.s32 8, %v265_v34 }
  0x47   :  { %185 = vrot.lane.b32.xlu1 %v1250_v19, %s1065_s23  ;;  %v173_v22 = vmul.f32 0.25, %v164_v18  ;;  %v174_v23 = vmul.f32 0.25, %v171_v21 }
  0x48   :  { %183 = vrot.lane.b32.xlu0 %v1255_v20, %s1065_s23  ;;  %vm270_vm3 = vcmp.lt.s32.totalorder %v266_v35, 15 }
  0x49   :  { %v271_v24 = vmul.f32 %v173_v22, %v173_v22  ;;  %v272_v27 = vmul.f32 %v174_v23, %v174_v23 }
  0x4b   :  { %209 = vrot.lane.b32.xlu1 %v1250_v19, %s1066_s25 }
  0x4c   :  { %207 = vrot.lane.b32.xlu0 %v1255_v20, %s1066_s25 }
  0x4f   :  { %189 = vrot.lane.b32.xlu1 %v1272_v25, %s1065_s23 }
  0x50   :  { %187 = vrot.lane.b32.xlu0 %v1277_v26, %s1065_s23 }
  0x53   :  { %213 = vrot.lane.b32.xlu1 %v1272_v25, %s1066_s25 }
  0x54   :  { %211 = vrot.lane.b32.xlu0 %v1277_v26, %s1066_s25 }
  0x74   :  { %s861_s2 = spop %860 }
  0x75   :  { %v1315_v28 = vstv %s861_s2 }
  0x76   :  { %v274_v29 = vmul.f32 %v1315_v28, %v271_v24  ;;  %v275_v30 = vmul.f32 %v1315_v28, %v272_v27 }
  0x78   :  { %v276_v31 = vadd.f32 1.0, %v274_v29  ;;  %v277_v32 = vadd.f32 1.0, %v275_v30 }
  0x7a   :  { %891 = vrcp.f32 %v276_v31 }
  0x7b   :  { %893 = vrcp.f32 %v277_v32 }
  0x87   :  { %v892_v36 = vpop.eup %891 }
  0x88   :  { %v894_v37 = vpop.eup %893  ;;  %309 = vst.msk [vmem:[#allocation14] sm:$0xff] %vm157_vm1, %v892_v36  ;;  %v1321_v38 = vmul.f32 0.24, %v892_v36 }
  0x89   :  { %v283_v39 = vsel %vm270_vm3, %v894_v37, 0.0 }
  0x8a   :  { %310 = vst.msk [vmem:[#allocation14 + $0x8] sm:$0xff] %vm157_vm1, %v283_v39  ;;  %v1324_v40 = vmul.f32 0.24, %v283_v39  ;;  %v322_v41 = vrot.slane %v1321_v38, 7  ;;  %v344_v42 = vsub.f32 1.0, %v1321_v38 }
  0x8c   :  { %v318_v43 = vrot.slane %v1324_v40, 7  ;;  %v345_v44 = vsub.f32 1.0, %v1324_v40 }
  0x8e   :  { %v1331_v45 = vsel %vm321_vm4, %v322_v41, %v318_v43  ;;  %v1334_v46 = vsel %vm321_vm4, %v318_v43, %v322_v41 }
  0x8f   :  { %v1337_v47 = vsub.f32 %v345_v44, %v1331_v45  ;;  %v1340_v48 = vsub.f32 %v344_v42, %v1334_v46 }
  0xa9   :  { %v180_v49 = vpop.permute.xlu1 %179 }
  0xaa   :  { %v176_v50 = vpop.permute.xlu0 %175 }
  0xad   :  { %v182_v51 = vpop.permute.xlu1 %181 }
  0xae   :  { %v178_v52 = vpop.permute.xlu0 %177 }
  0xb1   :  { %v202_v53 = vpop.permute.xlu1 %201 }
  0xb2   :  { %v200_v54 = vpop.permute.xlu0 %199  ;;  %v225_v61 = vsel %vm223_vm5, %v178_v52, %v202_v53 }
  0xb3   :  { %v224_v62 = vsel %vm223_vm5, %v176_v50, %v200_v54  ;;  %v233_v18 = vsub.f32 %v225_v61, %v1233_v17 }
  0xb4   :  { %v232_v21 = vsub.f32 %v224_v62, %v1218_v15 }
  0xb5   :  { %v206_v55 = vpop.permute.xlu1 %205  ;;  %v241_v32 = vand.u32 2147483647, %v233_v18 }
  0xb6   :  { %v204_v56 = vpop.permute.xlu0 %203  ;;  %v227_v59 = vsel %vm223_vm5, %v182_v51, %v206_v55 }
  0xb7   :  { %v226_v60 = vsel %vm223_vm5, %v180_v49, %v204_v56  ;;  %v235_v63 = vsub.f32 %v227_v59, %v1228_v16  ;;  %v255_v39 = vsel %vm157_vm1, %v241_v32, 0.0 }
  0xb8   :  { %v234_v0 = vsub.f32 %v226_v60, %v1213_v14  ;;  %v240_v14 = vand.u32 2147483647, %v232_v21 }
  0xb9   :  { %v186_v57 = vpop.permute.xlu1 %185  ;;  %v243_v29 = vand.u32 2147483647, %v235_v63 }
  0xba   :  { %v184_v58 = vpop.permute.xlu0 %183  ;;  %v242_v30 = vand.u32 2147483647, %v234_v0 }
  0xbb   :  { %v256_v17 = vsel %vm157_vm1, %v243_v29, 0.0 }
  0xbc   :  { %v249_v15 = vsel %vm157_vm1, %v242_v30, 0.0  ;;  %v257_v50 = vadd.f32 %v256_v17, %v255_v39 }
  0xbd   :  { %v210_v12 = vpop.permute.xlu1 %209 }
  0xbe   :  { %v208_v13 = vpop.permute.xlu0 %207  ;;  %v229_v22 = vsel %vm223_vm5, %v186_v57, %v210_v12 }
  0xbf   :  { %v228_v23 = vsel %vm223_vm5, %v184_v58, %v208_v13  ;;  %v237_v24 = vsub.f32 %v229_v22, %v1250_v19  ;;  %v248_v19 = vsel %vm157_vm1, %v240_v14, 0.0  ;;  %v268_v13 = vand.u32 127, %v264_v33 }
  0xc0   :  { %v236_v27 = vsub.f32 %v228_v23, %v1255_v20  ;;  %v250_v51 = vadd.f32 %v249_v15, %v248_v19 }
  0xc1   :  { %v190_v31 = vpop.permute.xlu1 %189  ;;  %v245_v34 = vand.u32 2147483647, %v237_v24  ;;  %v288_v18 = vand.u32 15, %v268_v13 }
  0xc2   :  { %v188_v16 = vpop.permute.xlu0 %187  ;;  %v244_v35 = vand.u32 2147483647, %v236_v27 }
  0xc3   :  { %v258_v42 = vsel %vm157_vm1, %v245_v34, 0.0  ;;  %vm296_vm6 = vcmp.lt.s32.totalorder %v288_v18, 15 }
  0xc4   :  { %v251_v43 = vsel %vm157_vm1, %v244_v35, 0.0  ;;  %v259_v54 = vadd.f32 %v258_v42, %v257_v50 }
  0xc5   :  { %v214_v36 = vpop.permute.xlu1 %213  ;;  %v252_v55 = vadd.f32 %v251_v43, %v250_v51 }
  0xc6   :  { %v212_v37 = vpop.permute.xlu0 %211  ;;  %v231_v20 = vsel %vm223_vm5, %v190_v31, %v214_v36 }
  0xc7   :  { %v230_v41 = vsel %vm223_vm5, %v188_v16, %v212_v37  ;;  %v239_v44 = vsub.f32 %v231_v20, %v1272_v25 }
  0xc8   :  { %v238_v49 = vsub.f32 %v230_v41, %v1277_v26 }
  0xc9   :  { %v247_v52 = vand.u32 2147483647, %v239_v44 }
  0xca   :  { %v246_v53 = vand.u32 2147483647, %v238_v49 }
  0xcb   :  { %v260_v56 = vsel %vm157_vm1, %v247_v52, 0.0 }
  0xcc   :  { %v253_v57 = vsel %vm157_vm1, %v246_v53, 0.0  ;;  %v261_v58 = vadd.f32 %v260_v56, %v259_v54 }
  0xcd   :  { %v254_v59 = vadd.f32 %v253_v57, %v252_v55 }
  0xce   :  { %v263_v61 = vmul.f32 0.25, %v261_v58 }
  0xcf   :  { %v262_v60 = vmul.f32 0.25, %v254_v59 }
  0xd0   :  { %v298_v63 = vmul.f32 %v263_v61, %v263_v61 }
  0xd1   :  { %v297_v62 = vmul.f32 %v262_v60, %v262_v60 }
  0xd2   :  { %v300_v26 = vmul.f32 %v298_v63, %v1315_v28 }
  0xd3   :  { %v299_v25 = vmul.f32 %v297_v62, %v1315_v28 }
  0xd4   :  { %v302_v12 = vadd.f32 1.0, %v300_v26 }
  0xd5   :  { %v301_v0 = vadd.f32 1.0, %v299_v25 }
  0xd7   :  { %895 = vrcp.f32 %v301_v0 }
  0xd8   :  { %897 = vrcp.f32 %v302_v12 }
  0xe4   :  { %v896_v21 = vpop.eup %895 }
  0xe5   :  { %v898_v22 = vpop.eup %897  ;;  %v307_v23 = vsel %vm296_vm6, %v896_v21, 0.0 }
  0xe6   :  { %v308_v24 = vsel %vm296_vm6, %v898_v22, 0.0  ;;  %v1369_v27 = vmul.f32 0.24, %v307_v23  ;;  %311 = vst.msk [vmem:[#allocation16] sm:$0xff] %vm157_vm1, %v307_v23 }
  0xe7   :  { %v1372_v29 = vmul.f32 0.24, %v308_v24  ;;  %312 = vst.msk [vmem:[#allocation16 + $0x8] sm:$0xff] %vm157_vm1, %v308_v24 }
  0xe8   :  { %329 = vrot.lane.b32.xlu0 %v1369_v27, %s1067_s17  ;;  %v348_v28 = vsub.f32 %v1340_v48, %v1369_v27 }
  0xe9   :  { %331 = vrot.lane.b32.xlu1 %v1372_v29, %s1067_s17  ;;  %v349_v33 = vsub.f32 %v1337_v47, %v1372_v29 }
  0xec   :  { %335 = vrot.lane.b32.xlu0 %v1369_v27, %s1068_s4 }
  0xed   :  { %337 = vrot.lane.b32.xlu1 %v1372_v29, %s1068_s4 }
 0x15a   :  { %v330_v30 = vpop.permute.xlu0 %329 }
 0x15b   :  { %v332_v31 = vpop.permute.xlu1 %331 }
 0x15d   :  { %807 = sbr.rel (%p810_p6) target bundleno = 1292 (0x50c), region = 93 }
 0x15e   :  { %v336_v16 = vpop.permute.xlu0 %335 }
 0x15f   :  { %v338_v32 = vpop.permute.xlu1 %337  ;;  %v1384_v14 = vsel %vm341_vm7, %v330_v30, %v336_v16 }
 0x160   :  { %v1387_v48 = vsel %vm341_vm7, %v332_v31, %v338_v32  ;;  %v1390_v34 = vsub.f32 %v348_v28, %v1384_v14 }
 0x161   :  { %v1393_v47 = vsub.f32 %v349_v33, %v1387_v48 }
 0x162 LB: > { %v376_v35 = vld [vmem:[#allocation2 + $0x8] sm:$0xff]  ;;  %v375_v17 = vld [vmem:[#allocation2] sm:$0xff]  ;;  %s1069_s21 = smov 127   ;;  %v1070_v15 = vmov 0.0   ;;  %s1071_s7 = smov 31   ;;  %vm1072_vm8 = vmmov 0   ;;  %s1057_s20 = sphi %s1398_s20, %s372_s20  }
 0x163   : > { %395 = vrot.lane.b32.xlu0 %v376_v35, %s1069_s21  ;;  %393 = vrot.lane.b32.xlu1 %v375_v17, %s1069_s21  ;;  %s1073_s3 = smov 97   ;;  %s1074_s8 = smov 1   ;;  %v379_v36 = vrot.slane %v375_v17, 1  ;;  %v380_v37 = vrot.slane %v376_v35, 1  ;;  %v386_v19 = vrot.slane %v376_v35, 7  ;;  %v388_v20 = vrot.slane %v375_v17, 7 }
 0x164   : > { %830 = vmatprep.subr.mxu0 %v1070_v15  ;;  %837 = vmatprep.subr.mxu1 %v1070_v15  ;;  %v422_v41 = vmul.f32 %v376_v35, %v1393_v47  ;;  %v421_v53 = vmul.f32 %v375_v17, %v1390_v34  ;;  %vm439_vm9 = vcmask 130048   ;;  %vm665_vm10 = vcmask 64512   ;;  %s372_s20 = sadd.s32 1, %s1057_s20  }
 0x165   : > { %838 = vmatpush3.msra.mxu1 %v1187_v7  ;;  %834 = vmatprep.mubr.msk.f32.mxu0 %vm1072_vm8, %v1070_v15  ;;  %v385_v39 = vsel %vm112_vm2, %v380_v37, %v379_v36  ;;  %v389_v43 = vsel %vm321_vm4, %v388_v20, %v386_v19  ;;  %v381_v44 = vsel %vm112_vm2, %v379_v36, %v380_v37  ;;  %p371_p7 = scmp.ge.s32.totalorder %s372_s20, %s1478_s0 }
 0x166   : > { %839 = vmatprep.subr.mxu1 %v1070_v15  ;;  %845 = vmatprep.mubr.msk.f32.mxu1 %vm1072_vm8, %v1070_v15  ;;  %v424_v42 = vmul.f32 %v385_v39, %v1324_v40  ;;  %v428_v52 = vmul.f32 %v389_v43, %v1331_v45  ;;  %v423_v54 = vmul.f32 %v381_v44, %v1321_v38 }
 0x167   : > { %401 = vrot.lane.b32.xlu0 %v376_v35, %s1071_s7  ;;  %399 = vrot.lane.b32.xlu1 %v375_v17, %s1071_s7  ;;  %v392_v55 = vsel %vm321_vm4, %v386_v19, %v388_v20 }
 0x168   : > { %840 = vmatpush3.msra.mxu1 %v1182_v6  ;;  %v426_v51 = vadd.f32 %v424_v42, %v422_v41  ;;  %v425_v61 = vadd.f32 %v423_v54, %v421_v53  ;;  %v427_v62 = vmul.f32 %v392_v55, %v1334_v46 }
 0x169   : > { %841 = vmatprep.subr.mxu1 %v1070_v15 }
 0x16a   : > { %842 = vmatpush3.msra.mxu1 %v1177_v5  ;;  %v430_v59 = vadd.f32 %v428_v52, %v426_v51  ;;  %v429_v13 = vadd.f32 %v427_v62, %v425_v61 }
 0x16b   : > { %409 = vrot.lane.b32.xlu0 %v376_v35, %s1073_s3  ;;  %415 = vrot.lane.b32.xlu1 %v376_v35, %s1074_s8 }
 0x16c   : > { %843 = vmatprep.subr.mxu1 %v1070_v15 }
 0x16d   : > { %844 = vmatpush3.msra.mxu1 %v1172_v4 }
 0x16f   : > { %407 = vrot.lane.b32.xlu0 %v375_v17, %s1073_s3  ;;  %413 = vrot.lane.b32.xlu1 %v375_v17, %s1074_s8 }
 0x1d5   : > { %v396_v49 = vpop.permute.xlu0 %395  ;;  %v394_v50 = vpop.permute.xlu1 %393 }
 0x1d9   : > { %v402_v56 = vpop.permute.xlu0 %401  ;;  %v400_v57 = vpop.permute.xlu1 %399 }
 0x1da   : > { %v406_v58 = vsel %vm223_vm5, %v396_v49, %v402_v56  ;;  %v405_v63 = vsel %vm223_vm5, %v394_v50, %v400_v57 }
 0x1db   : > { %v432_v60 = vmul.f32 %v406_v58, %v1372_v29  ;;  %v431_v18 = vmul.f32 %v405_v63, %v1369_v27 }
 0x1dd   : > { %v410_v25 = vpop.permute.xlu0 %409  ;;  %v416_v26 = vpop.permute.xlu1 %415  ;;  %v434_v12 = vadd.f32 %v432_v60, %v430_v59  ;;  %v433_v33 = vadd.f32 %v431_v18, %v429_v13 }
 0x1de   : > { %v420_v0 = vsel %vm341_vm7, %v410_v25, %v416_v26 }
 0x1df   : > { %v436_v21 = vmul.f32 %v420_v0, %v1387_v48 }
 0x1e1   : > { %v408_v22 = vpop.permute.xlu0 %407  ;;  %v414_v23 = vpop.permute.xlu1 %413  ;;  %v438_v24 = vadd.f32 %v436_v21, %v434_v12 }
 0x1e2   : > { %v419_v28 = vsel %vm341_vm7, %v408_v22, %v414_v23 }
 0x1e3   : > { %v435_v30 = vmul.f32 %v419_v28, %v1384_v14  ;;  %831 = vmatpush3.msra.mxu0 %v438_v24 }
 0x1e4   : > { %832 = vmatprep.subr.mxu0 %v1070_v15 }
 0x1e5   : > { %v437_v31 = vadd.f32 %v435_v30, %v433_v33 }
 0x1e7   : > { %833 = vmatpush3.msra.mxu0 %v437_v31 }
 0x1e8   : > { %835 = vmatmul.mubr.msk.f32.vlgmr.msra.gmra.mxu0 %vm439_vm9, %v1166_v3  ;;  %848 = vmatprep.subr.mxu0 %v1070_v15 }
 0x1e9   : > { %849 = vmatpush3.msra.mxu0 %v1207_v11  ;;  %852 = vmatprep.mubr.msk.f32.mxu0 %vm1072_vm8, %v1070_v15 }
 0x1ea   : > { %850 = vmatprep.subr.mxu0 %v1070_v15 }
 0x1eb   : > { %851 = vmatpush3.msra.mxu0 %v1202_v10 }
 0x2a8   : > { %v509_v16 = vpop.f32.mrf.mxu0 }
 0x2a9   : > { %846 = vmatmul.mubr.msk.f32.vlgmr.msra.gmra.mxu1 %vm157_vm1, %v509_v16 }
 0x2aa   : > { %v836_v32 = vpop.f32.mrf.mxu0 }
 0x369   : > { %v582_v35 = vpop.f32.mrf.mxu1 }
 0x36a   : > { %v583_v17 = vadd.f32 1e-08, %v582_v35 }
 0x36b   : > { %v847_v36 = vpop.f32.mrf.mxu1 }
 0x36c   : > { %899 = vrcp.f32 %v583_v17 }
 0x379   : > { %v900_v37 = vpop.eup %899 }
 0x37a   : > { %v587_v39 = vmul.f32 %v900_v37, %v583_v17 }
 0x37c   : > { %v588_v19 = vsub.f32 2.0, %v587_v39 }
 0x37e   : > { %v589_v20 = vmul.f32 %v900_v37, %v588_v19 }
 0x380   : > { %v590_v41 = vmul.f32 %v589_v20, %v1162_v1 }
 0x382   : > { %v591_v42 = vsel %vm354_vm0, %v590_v41, 1.0 }
 0x383   : > { %853 = vmatmul.mubr.msk.f32.vlgmr.msra.gmra.mxu0 %vm439_vm9, %v591_v42 }
 0x384   : > { %857 = vmatprep.mubr.msk.f32.mxu0 %vm665_vm10, %v1192_v8 }
 0x443   : > { %v661_v15 = vpop.f32.mrf.mxu0 }
 0x444   : > { %855 = vmatprep.subr.mxu0 %v661_v15 }
 0x445   : > { %v854_v43 = vpop.f32.mrf.mxu0  ;;  %856 = vmatpush3.msra.mxu0 %v661_v15 }
 0x446   : > { %858 = vmatmul.mubr.msk.f32.vlgmr.msra.gmra.mxu0 %vm665_vm10, %v1197_v9 }
 0x506   : > { %v859_v44 = vpop.f32.mrf.mxu0 }
 0x507   : > { %v748_v49 = vmul.f32 %v859_v44, %v438_v24  ;;  %374 = sbr.rel (!%p371_p7) target bundleno = 354 (0x162), region = 99 }
 0x508   : > { %v738_v50 = vpop.f32.mrf.mxu0 }
 0x509   : > { %750 = vst.msk [vmem:[#allocation2 + $0x8] sm:$0xff] %vm157_vm1, %v748_v49  ;;  %v747_v51 = vmul.f32 %v738_v50, %v437_v31 }
 0x50b   : > { %749 = vst.msk [vmem:[#allocation2] sm:$0xff] %vm157_vm1, %v747_v51 }
 0x50c PF:  { %s1075_s9 = smov [#allocation14]   ;;  %s1076_s5 = smov [#allocation13]  }
 0x50d   :  { %s772_s24 = sshll.u32 %s1075_s9, 4  ;;  %s760_s6 = sshll.u32 %s1076_s5, 4  ;;  %s773_s24 = int_to_ptr.vmem [resolvable:$true] %s772_s24  ;;  %s761_s6 = int_to_ptr.vmem [resolvable:$true] %s760_s6 }
 0x50e   :  { %s981_s25 = scalar_lea.vmem %s773_s24, 256  ;;  %p986_p9 = scmp.lt.s32.totalorder %s773_s24, %s773_s24 }
 0x50f   :  { %p982_p8 = scmp.ne.s32.totalorder %s773_s24, %s981_s25  ;;  %p987_p10 = scmp.lt.s32.totalorder %s981_s25, %s981_s25 }
 0x510   :  { %v752_v53 = vld [vmem:[#allocation2 + $0x8] sm:$0xff] }
 0x511   :  { %754 = vst.msk [vmem:[#allocation13 + $0x8] sm:$0xff] %vm157_vm1, %v752_v53  ;;  %p988_p11 = por %p987_p10, %p986_p9 }
 0x512   :  { %v751_v52 = vld [vmem:[#allocation2] sm:$0xff] }
 0x513   :  { %753 = vst.msk [vmem:[#allocation13] sm:$0xff] %vm157_vm1, %v751_v52  ;;  %p989_p12 = pnand %p988_p11, %p982_p8 }
 0x515   :  { %992 = shalt.err (!%p989_p12)
}
 0x516   :  { %778 = dma.vmem_to_hbm [thread:$0]  %s773_s24, 256, %s1489_s11, [#allocation15], %s1061_s29, %s1061_s29, %s1062_s30  }
 0x517   :  { %s1001_s27 = scalar_lea.vmem %s761_s6, 256  ;;  %p1006_p0 = scmp.lt.s32.totalorder %s761_s6, %s761_s6 }
 0x518   :  { %p1002_p13 = scmp.ne.s32.totalorder %s761_s6, %s1001_s27  ;;  %p1007_p1 = scmp.lt.s32.totalorder %s1001_s27, %s1001_s27 }
 0x51a   :  { %p1008_p2 = por %p1007_p1, %p1006_p0 }
 0x51c   :  { %p1009_p3 = pnand %p1008_p2, %p1002_p13 }
 0x51e   :  { %1012 = shalt.err (!%p1009_p3)
}
 0x51f   :  { %766 = dma.vmem_to_hbm [thread:$0]  %s761_s6, 256, %s1488_s10, [#allocation7], %s1061_s29, %s1061_s29, %s1062_s30  }
 0x520   :  { %s1077_s13 = smov [#allocation16]  }
 0x521   :  { %s784_s14 = sshll.u32 %s1077_s13, 4  ;;  %s785_s14 = int_to_ptr.vmem [resolvable:$true] %s784_s14 }
 0x522   :  { %s1021_s15 = scalar_lea.vmem %s785_s14, 256  ;;  %p1026_p5 = scmp.lt.s32.totalorder %s785_s14, %s785_s14 }
 0x523   :  { %p1022_p4 = scmp.ne.s32.totalorder %s785_s14, %s1021_s15  ;;  %p1027_p6 = scmp.lt.s32.totalorder %s1021_s15, %s1021_s15 }
 0x525   :  { %p1028_p7 = por %p1027_p6, %p1026_p5 }
 0x527   :  { %p1029_p8 = pnand %p1028_p7, %p1022_p4 }
 0x529   :  { %1032 = shalt.err (!%p1029_p8)
}
 0x52a   :  { %790 = dma.vmem_to_hbm [thread:$0]  %s785_s14, 256, %s1490_s12, [#allocation15], %s1061_s29, %s1061_s29, %s1062_s30  }
 0x52b   :  { %1051 = dma.done.wait [#allocation7], 256  }
 0x52c   :  { %1052 = vsyncadd [#allocation7], 4294967040 }
 0x52d   :  { %1053 = dma.done.wait [#allocation15], 512  }
 0x52e   :  { %1054 = vsyncadd [#allocation15], 4294966784 }
 0x52f   :  { %800 = vsyncpa [#allocation6], 1 }
 0x530   :  { %801 = vsyncpa [#allocation9], 1 }
 0x531   :  { %802 = vsyncpa [#allocation12], 1 }
 0x532   :  { %803 = vsyncpa [#allocation7], 1 }
 0x533   :  { %804 = vsyncpa [#allocation15], 1 }

</bundles_post_ra>
